<compile_context>
chip_gen: v6e
topology: v6e:2x2x1
jax: 0.10.0
libtpu: 0.0.40
codegen_flags: <defaults>
</compile_context>

<pallas_src>
import math
import numpy as np

import jax
import jax.numpy as jnp
from jax.experimental import pallas as pl
from jax.experimental.pallas import tpu as pltpu


# ------------------------------ Pallas kernel ------------------------------- #

def _inpaint_fused_kernel(scal_ref,                           # SMEM (T*U, 8) f32
                          x0_ref, img_ref, mask_ref, gb_ref,  # resident VMEM tiles
                          eps_ref, z_ref, rn_ref,             # per-step noise tiles
                          out_ref):                           # resident VMEM state x_t
    """One (t, u) RePaint step; the 1-D grid runs over all T*U steps sequentially.

    scal_ref row layout (per grid step s):
      [0] sqrt(alpha_t)
      [1] (1 - alpha_t)      if t > 1 else 0     (epsilon scale, known branch)
      [2] 1 / sqrt(1 - beta_t)
      [3] beta_t / sqrt(1 - alpha_t)
      [4] sqrt(beta_t)       if t > 1 else 0     (z scale, unknown branch)
      [5] sqrt(1 - beta_t)   if resample else 1  (resample multiplier)
      [6] sqrt(beta_t)       if resample else 0  (resample noise scale)
      [7] sin(0.1 * t)                           (time embedding for synthetic model)
    """
    s = pl.program_id(0)

    # Initialize the resident state x_T once.  The output block index never
    # changes, so the block stays in VMEM across the whole grid and is written
    # back to HBM only after the last step.
    @pl.when(s == 0)
    def _():
        out_ref[...] = x0_ref[...]

    sqrt_alpha = scal_ref[s, 0]
    eps_scale = scal_ref[s, 1]
    inv_sqrt_1m_beta = scal_ref[s, 2]
    beta_over_sqrt_1m_alpha = scal_ref[s, 3]
    z_scale = scal_ref[s, 4]
    resample_mul = scal_ref[s, 5]
    resample_noise_scale = scal_ref[s, 6]
    temb = scal_ref[s, 7]

    x = out_ref[...]
    m = mask_ref[...]

    # Synthetic stand-in for the *external* denoiser `model(x, t)` (the real
    # model is an argument to InPaint.forward, not part of the module):
    # per-channel gain + time-modulated per-channel bias, tanh.  Pure VPU + EUP.
    eps_hat = jnp.tanh(gb_ref[0] * x + gb_ref[1] * temb)

    # x_{t-1} on known pixels:   sqrt(alpha)*images + (1 - alpha)*epsilon
    known = sqrt_alpha * img_ref[...] + eps_scale * eps_ref[0]
    # x_{t-1} on unknown pixels: 1/sqrt(1-beta)*(x - beta*eps_hat/sqrt(1-alpha)) + sqrt(beta)*z
    unknown = (inv_sqrt_1m_beta * (x - beta_over_sqrt_1m_alpha * eps_hat)
               + z_scale * z_ref[0])
    x_tm1 = known * m + unknown * (1.0 - m)

    # Optional resampling back to step t, folded into scalars (mul=1, add=0 when off):
    #   x_t <- sqrt(1-beta)*x_{t-1} + sqrt(beta)*noise
    out_ref[...] = resample_mul * x_tm1 + resample_noise_scale * rn_ref[0]


# ------------------------------ host helpers -------------------------------- #

def _build_scalar_table(betas, U):
    """Precompute the (T*U, 8) per-step scalar table with NumPy (no device syncs)."""
    betas = np.asarray(betas, dtype=np.float64)
    alphas_cumprod = np.cumprod(1.0 - betas)
    T = int(betas.shape[0])
    rows = []
    for t in range(T, 0, -1):
        beta_t = float(betas[t - 1])
        alpha_t = float(alphas_cumprod[t - 1])          # prod(1 - betas[:t])
        for u in range(U):
            resample = (u < U - 1) and (t > 1)
            rows.append([
                math.sqrt(alpha_t),
                (1.0 - alpha_t) if t > 1 else 0.0,
                1.0 / math.sqrt(1.0 - beta_t),
                beta_t / math.sqrt(1.0 - alpha_t),
                math.sqrt(beta_t) if t > 1 else 0.0,
                math.sqrt(1.0 - beta_t) if resample else 1.0,
                math.sqrt(beta_t) if resample else 0.0,
                math.sin(0.1 * t),
            ])
    return np.asarray(rows, dtype=np.float32)


@jax.jit
def _inpaint_run(scal_tab, images, mask_known, gain, bias, key):
    B, C, H, W = images.shape
    N = B * H * W
    sub_per_c = 8 // math.gcd(C, 8)      # sublanes per channel so rows % 8 == 0
    rows = C * sub_per_c                 # demo: 4 * 2 = 8 sublanes (full)
    lanes = N // sub_per_c               # demo: 512 / 2 = 256 lanes (2 lane tiles)
    TU = scal_tab.shape[0]

    def to_tile(a):  # NCHW -> (rows, lanes), sublane-full / lane-dense, channel-major rows
        return jnp.transpose(a, (1, 0, 2, 3)).reshape(rows, lanes)

    img_t = to_tile(images.astype(jnp.float32))
    mask_t = to_tile(jnp.broadcast_to(mask_known, images.shape).astype(jnp.float32))

    # Per-channel (gain, bias) expanded to the tile layout (row = c*sub_per_c + r).
    gb = jnp.stack([
        jnp.broadcast_to(jnp.repeat(gain.astype(jnp.float32), sub_per_c)[:, None],
                         (rows, lanes)),
        jnp.broadcast_to(jnp.repeat(bias.astype(jnp.float32), sub_per_c)[:, None],
                         (rows, lanes)),
    ])

    # All randomness generated directly in the kernel layout (no per-step transposes).
    k0, k1, k2, k3 = jax.random.split(key, 4)
    x0 = jax.random.normal(k0, (rows, lanes), dtype=jnp.float32)
    eps_n = jax.random.normal(k1, (TU, rows, lanes), dtype=jnp.float32)
    z_n = jax.random.normal(k2, (TU, rows, lanes), dtype=jnp.float32)
    rn_n = jax.random.normal(k3, (TU, rows, lanes), dtype=jnp.float32)

    resident2 = lambda s: (0, 0)
    resident3 = lambda s: (0, 0, 0)
    step3 = lambda s: (s, 0, 0)

    out = pl.pallas_call(
        _inpaint_fused_kernel,
        grid=(TU,),
        in_specs=[
            pl.BlockSpec(memory_space=pltpu.MemorySpace.SMEM),   # per-step scalar table
            pl.BlockSpec((rows, lanes), resident2),              # x0 (initial noise)
            pl.BlockSpec((rows, lanes), resident2),              # conditioning images
            pl.BlockSpec((rows, lanes), resident2),              # known-pixel mask
            pl.BlockSpec((2, rows, lanes), resident3),           # denoiser gain / bias
            pl.BlockSpec((1, rows, lanes), step3),               # epsilon noise (per step)
            pl.BlockSpec((1, rows, lanes), step3),               # z noise       (per step)
            pl.BlockSpec((1, rows, lanes), step3),               # resample noise(per step)
        ],
        out_specs=pl.BlockSpec((rows, lanes), resident2),        # x stays resident in VMEM
        out_shape=jax.ShapeDtypeStruct((rows, lanes), jnp.float32),
        compiler_params=pltpu.CompilerParams(
            dimension_semantics=("arbitrary",),   # sequential dependence across steps
        ),
    )(scal_tab, x0, img_t, mask_t, gb, eps_n, z_n, rn_n)

    return jnp.transpose(out.reshape(C, B, H, W), (1, 0, 2, 3))


def inpaint_forward(betas, model_params, images, mask_known, U=2, key=None):
    """Reproduces InPaint.forward semantics with a single fused Pallas kernel.

    images:     (B, C, H, W) float32 (NCHW) -- conditioning image (known pixels only).
    mask_known: (B, 1, H, W) bool           -- True where pixels are known.
    Returns     (B, C, H, W) float32 generated samples.
    """
    B, C, H, W = images.shape
    N = B * H * W
    sub_per_c = 8 // math.gcd(C, 8)
    if N % sub_per_c != 0 or (N // sub_per_c) % 128 != 0:
        # TODO(synk): for larger images add a lane-tiled "parallel" spatial grid
        # axis (and set vmem_limit_bytes; v7x has only 64 MiB VMEM) instead of
        # the single resident tile used here.
        raise ValueError("unsupported shape for the single-tile fused kernel")
    scal_tab = jnp.asarray(_build_scalar_table(betas, U))
    gain, bias = model_params
    return _inpaint_run(scal_tab, images, mask_known, gain, bias, key)


# ----------------------------------- main ------------------------------------ #

if __name__ == "__main__":
    key = jax.random.PRNGKey(0)
    B, C, H, W = 2, 4, 16, 16

    key, k_img, k_g, k_b, k_run = jax.random.split(key, 5)
    images = jax.random.normal(k_img, (B, C, H, W), dtype=jnp.float32)

    # known pixels: bottom half of the image (same construction as InPaint.sample)
    mask_known = jnp.zeros((B, 1, H, W), dtype=bool).at[:, :, H // 2:, :].set(True)
    images_known = images * mask_known

    # deterministic synthetic denoiser parameters (the real denoiser `model` is an
    # external argument to InPaint.forward; InPaint itself has no parameters)
    gain = 0.1 * jax.random.normal(k_g, (C,), dtype=jnp.float32)
    bias = 0.05 * jax.random.normal(k_b, (C,), dtype=jnp.float32)

    # small synthetic diffusion schedule, built host-side with NumPy
    num_timesteps = 4
    betas = np.linspace(1e-4, 2e-2, num_timesteps, dtype=np.float32)

    out = inpaint_forward(betas, (gain, bias), images_known, mask_known, U=2, key=k_run)
    out = jax.block_until_ready(out)

    assert out.shape == (B, C, H, W)
    assert bool(jnp.all(jnp.isfinite(out)))
    print("KERNEL_OK")
</pallas_src>

<mosaic_0001>
module attributes {stable_mosaic.version = 11 : i64} {
  func.func @_inpaint_fused_kernel(%arg0: i32, %arg1: memref<8x8xf32, #tpu.memory_space<smem>>, %arg2: memref<8x256xf32, #tpu.memory_space<vmem>>, %arg3: memref<8x256xf32, #tpu.memory_space<vmem>>, %arg4: memref<8x256xf32, #tpu.memory_space<vmem>>, %arg5: memref<2x8x256xf32, #tpu.memory_space<vmem>>, %arg6: memref<1x8x256xf32, #tpu.memory_space<vmem>>, %arg7: memref<1x8x256xf32, #tpu.memory_space<vmem>>, %arg8: memref<1x8x256xf32, #tpu.memory_space<vmem>>, %arg9: memref<8x256xf32, #tpu.memory_space<vmem>>) attributes {dimension_semantics = [#tpu.dimension_semantics<arbitrary>], iteration_bounds = array<i64: 8>, scalar_prefetch = 0 : i64, scratch_operands = 0 : i64, tpu.core_type = #tpu.core_type<tc>, window_params = [{transform_indices = @transform_0, window_bounds = array<i64: 8, 8>}, {pipeline_mode = #tpu.pipeline_mode<synchronous>, transform_indices = @transform_1, window_bounds = array<i64: 8, 256>}, {pipeline_mode = #tpu.pipeline_mode<synchronous>, transform_indices = @transform_2, window_bounds = array<i64: 8, 256>}, {pipeline_mode = #tpu.pipeline_mode<synchronous>, transform_indices = @transform_3, window_bounds = array<i64: 8, 256>}, {pipeline_mode = #tpu.pipeline_mode<synchronous>, transform_indices = @transform_4, window_bounds = array<i64: 2, 8, 256>}, {transform_indices = @transform_5, window_bounds = array<i64: 1, 8, 256>}, {transform_indices = @transform_6, window_bounds = array<i64: 1, 8, 256>}, {transform_indices = @transform_7, window_bounds = array<i64: 1, 8, 256>}, {pipeline_mode = #tpu.pipeline_mode<synchronous>, transform_indices = @transform_8, window_bounds = array<i64: 8, 256>}]} {
    %c0_i32 = arith.constant 0 : i32
    %0 = arith.cmpi eq, %arg0, %c0_i32 : i32
    %1 = arith.extui %0 : i1 to i32
    %c0_i32_0 = arith.constant 0 : i32
    %2 = arith.cmpi ne, %1, %c0_i32_0 : i32
    scf.if %2 {
      %c0_24 = arith.constant 0 : index
      %c0_25 = arith.constant 0 : index
      %61 = vector.load %arg2[%c0_24, %c0_25] : memref<8x256xf32, #tpu.memory_space<vmem>>, vector<8x256xf32>
      %c0_26 = arith.constant 0 : index
      %c0_27 = arith.constant 0 : index
      %62 = vector.load %arg9[%c0_26, %c0_27] : memref<8x256xf32, #tpu.memory_space<vmem>>, vector<8x256xf32>
      tpu.vector_store %arg9[%c0_26, %c0_27], %61 {strides = array<i32>} : memref<8x256xf32, #tpu.memory_space<vmem>>, vector<8x256xf32>,
    } else {
    }
    %3 = arith.index_cast %arg0 : i32 to index
    %c0 = arith.constant 0 : index
    %4 = memref.load %arg1[%3, %c0] : memref<8x8xf32, #tpu.memory_space<smem>>
    %5 = arith.index_cast %arg0 : i32 to index
    %c1 = arith.constant 1 : index
    %6 = memref.load %arg1[%5, %c1] : memref<8x8xf32, #tpu.memory_space<smem>>
    %7 = arith.index_cast %arg0 : i32 to index
    %c2 = arith.constant 2 : index
    %8 = memref.load %arg1[%7, %c2] : memref<8x8xf32, #tpu.memory_space<smem>>
    %9 = arith.index_cast %arg0 : i32 to index
    %c3 = arith.constant 3 : index
    %10 = memref.load %arg1[%9, %c3] : memref<8x8xf32, #tpu.memory_space<smem>>
    %11 = arith.index_cast %arg0 : i32 to index
    %c4 = arith.constant 4 : index
    %12 = memref.load %arg1[%11, %c4] : memref<8x8xf32, #tpu.memory_space<smem>>
    %13 = arith.index_cast %arg0 : i32 to index
    %c5 = arith.constant 5 : index
    %14 = memref.load %arg1[%13, %c5] : memref<8x8xf32, #tpu.memory_space<smem>>
    %15 = arith.index_cast %arg0 : i32 to index
    %c6 = arith.constant 6 : index
    %16 = memref.load %arg1[%15, %c6] : memref<8x8xf32, #tpu.memory_space<smem>>
    %17 = arith.index_cast %arg0 : i32 to index
    %c7 = arith.constant 7 : index
    %18 = memref.load %arg1[%17, %c7] : memref<8x8xf32, #tpu.memory_space<smem>>
    %c0_1 = arith.constant 0 : index
    %c0_2 = arith.constant 0 : index
    %19 = vector.load %arg9[%c0_1, %c0_2] : memref<8x256xf32, #tpu.memory_space<vmem>>, vector<8x256xf32>
    %c0_3 = arith.constant 0 : index
    %c0_4 = arith.constant 0 : index
    %20 = vector.load %arg4[%c0_3, %c0_4] : memref<8x256xf32, #tpu.memory_space<vmem>>, vector<8x256xf32>
    %c0_5 = arith.constant 0 : index
    %c0_6 = arith.constant 0 : index
    %c0_7 = arith.constant 0 : index
    %21 = vector.load %arg5[%c0_5, %c0_6, %c0_7] : memref<2x8x256xf32, #tpu.memory_space<vmem>>, vector<1x8x256xf32>
    %22 = vector.shape_cast %21 : vector<1x8x256xf32> to vector<8x256xf32>
    %23 = arith.mulf %22, %19 : vector<8x256xf32>
    %c1_8 = arith.constant 1 : index
    %c0_9 = arith.constant 0 : index
    %c0_10 = arith.constant 0 : index
    %24 = vector.load %arg5[%c1_8, %c0_9, %c0_10] : memref<2x8x256xf32, #tpu.memory_space<vmem>>, vector<1x8x256xf32>
    %25 = vector.shape_cast %24 : vector<1x8x256xf32> to vector<8x256xf32>
    %26 = vector.broadcast %18 : f32 to vector<8x256xf32>
    %27 = arith.mulf %25, %26 : vector<8x256xf32>
    %28 = arith.addf %23, %27 : vector<8x256xf32>
    %29 = math.tanh %28 : vector<8x256xf32>
    %c0_11 = arith.constant 0 : index
    %c0_12 = arith.constant 0 : index
    %30 = vector.load %arg3[%c0_11, %c0_12] : memref<8x256xf32, #tpu.memory_space<vmem>>, vector<8x256xf32>
    %31 = vector.broadcast %4 : f32 to vector<8x256xf32>
    %32 = arith.mulf %31, %30 : vector<8x256xf32>
    %c0_13 = arith.constant 0 : index
    %c0_14 = arith.constant 0 : index
    %c0_15 = arith.constant 0 : index
    %33 = vector.load %arg6[%c0_13, %c0_14, %c0_15] : memref<1x8x256xf32, #tpu.memory_space<vmem>>, vector<1x8x256xf32>
    %34 = vector.shape_cast %33 : vector<1x8x256xf32> to vector<8x256xf32>
    %35 = vector.broadcast %6 : f32 to vector<8x256xf32>
    %36 = arith.mulf %35, %34 : vector<8x256xf32>
    %37 = arith.addf %32, %36 : vector<8x256xf32>
    %38 = vector.broadcast %10 : f32 to vector<8x256xf32>
    %39 = arith.mulf %38, %29 : vector<8x256xf32>
    %40 = arith.subf %19, %39 : vector<8x256xf32>
    %41 = vector.broadcast %8 : f32 to vector<8x256xf32>
    %42 = arith.mulf %41, %40 : vector<8x256xf32>
    %c0_16 = arith.constant 0 : index
    %c0_17 = arith.constant 0 : index
    %c0_18 = arith.constant 0 : index
    %43 = vector.load %arg7[%c0_16, %c0_17, %c0_18] : memref<1x8x256xf32, #tpu.memory_space<vmem>>, vector<1x8x256xf32>
    %44 = vector.shape_cast %43 : vector<1x8x256xf32> to vector<8x256xf32>
    %45 = vector.broadcast %12 : f32 to vector<8x256xf32>
    %46 = arith.mulf %45, %44 : vector<8x256xf32>
    %47 = arith.addf %42, %46 : vector<8x256xf32>
    %48 = arith.mulf %37, %20 : vector<8x256xf32>
    %cst = arith.constant 1.000000e+00 : f32
    %49 = vector.broadcast %cst : f32 to vector<8x256xf32>
    %50 = arith.subf %49, %20 : vector<8x256xf32>
    %51 = arith.mulf %47, %50 : vector<8x256xf32>
    %52 = arith.addf %48, %51 : vector<8x256xf32>
    %53 = vector.broadcast %14 : f32 to vector<8x256xf32>
    %54 = arith.mulf %53, %52 : vector<8x256xf32>
    %c0_19 = arith.constant 0 : index
    %c0_20 = arith.constant 0 : index
    %c0_21 = arith.constant 0 : index
    %55 = vector.load %arg8[%c0_19, %c0_20, %c0_21] : memref<1x8x256xf32, #tpu.memory_space<vmem>>, vector<1x8x256xf32>
    %56 = vector.shape_cast %55 : vector<1x8x256xf32> to vector<8x256xf32>
    %57 = vector.broadcast %16 : f32 to vector<8x256xf32>
    %58 = arith.mulf %57, %56 : vector<8x256xf32>
    %59 = arith.addf %54, %58 : vector<8x256xf32>
    %c0_22 = arith.constant 0 : index
    %c0_23 = arith.constant 0 : index
    %60 = vector.load %arg9[%c0_22, %c0_23] : memref<8x256xf32, #tpu.memory_space<vmem>>, vector<8x256xf32>
    tpu.vector_store %arg9[%c0_22, %c0_23], %59 {strides = array<i32>} : memref<8x256xf32, #tpu.memory_space<vmem>>, vector<8x256xf32>,
    return
  }
  func.func @transform_0(%arg0: i32) -> (i32, i32) {
    %c0_i32 = arith.constant 0 : i32
    %c0_i32_0 = arith.constant 0 : i32
    %c0_i32_1 = arith.constant 0 : i32
    return %c0_i32, %c0_i32_0 : i32, i32
  }
  func.func @transform_1(%arg0: i32) -> (i32, i32) {
    %c0_i32 = arith.constant 0 : i32
    %c0_i32_0 = arith.constant 0 : i32
    %c0_i32_1 = arith.constant 0 : i32
    return %c0_i32, %c0_i32_0 : i32, i32
  }
  func.func @transform_2(%arg0: i32) -> (i32, i32) {
    %c0_i32 = arith.constant 0 : i32
    %c0_i32_0 = arith.constant 0 : i32
    %c0_i32_1 = arith.constant 0 : i32
    return %c0_i32, %c0_i32_0 : i32, i32
  }
  func.func @transform_3(%arg0: i32) -> (i32, i32) {
    %c0_i32 = arith.constant 0 : i32
    %c0_i32_0 = arith.constant 0 : i32
    %c0_i32_1 = arith.constant 0 : i32
    return %c0_i32, %c0_i32_0 : i32, i32
  }
  func.func @transform_4(%arg0: i32) -> (i32, i32, i32) {
    %c0_i32 = arith.constant 0 : i32
    %c0_i32_0 = arith.constant 0 : i32
    %c0_i32_1 = arith.constant 0 : i32
    %c0_i32_2 = arith.constant 0 : i32
    return %c0_i32, %c0_i32_0, %c0_i32_1 : i32, i32, i32
  }
  func.func @transform_5(%arg0: i32) -> (i32, i32, i32) {
    %c0_i32 = arith.constant 0 : i32
    %c0_i32_0 = arith.constant 0 : i32
    %c0_i32_1 = arith.constant 0 : i32
    return %arg0, %c0_i32, %c0_i32_0 : i32, i32, i32
  }
  func.func @transform_6(%arg0: i32) -> (i32, i32, i32) {
    %c0_i32 = arith.constant 0 : i32
    %c0_i32_0 = arith.constant 0 : i32
    %c0_i32_1 = arith.constant 0 : i32
    return %arg0, %c0_i32, %c0_i32_0 : i32, i32, i32
  }
  func.func @transform_7(%arg0: i32) -> (i32, i32, i32) {
    %c0_i32 = arith.constant 0 : i32
    %c0_i32_0 = arith.constant 0 : i32
    %c0_i32_1 = arith.constant 0 : i32
    return %arg0, %c0_i32, %c0_i32_0 : i32, i32, i32
  }
  func.func @transform_8(%arg0: i32) -> (i32, i32) {
    %c0_i32 = arith.constant 0 : i32
    %c0_i32_0 = arith.constant 0 : i32
    %c0_i32_1 = arith.constant 0 : i32
    return %c0_i32, %c0_i32_0 : i32, i32
  }
}

</mosaic_0001>

<bundles_post_ra>
// kernel: _inpaint_run.3
= control target key start
LH: loop header
LB: loop body
LE: loop exit
PB: predicated region body
PF: predicated region fallthrough
CT: control target
= control target key end

     0   :  { %13 = vsyncpa [#allocation3], 0  ;;  %s615_s27 = smov 0   ;;  %s740_s0 = inlined_call_operand.vmem [shape: f32[8,8], index: 0, kind: input, shape index: {}]   ;;  %s741_s1 = inlined_call_operand.vmem [shape: f32[8,256], index: 1, kind: input, shape index: {}]   ;;  %s742_s2 = inlined_call_operand.vmem [shape: f32[8,256], index: 2, kind: input, shape index: {}]   ;;  %s743_s3 = inlined_call_operand.vmem [shape: f32[8,256], index: 3, kind: input, shape index: {}]   ;;  %s744_s4 = inlined_call_operand.vmem [shape: f32[2,8,256], index: 4, kind: input, shape index: {}]   ;;  %s745_s5 = inlined_call_operand.vmem [shape: f32[8,8,256], index: 5, kind: input, shape index: {}]   ;;  %s746_s6 = inlined_call_operand.vmem [shape: f32[8,8,256], index: 6, kind: input, shape index: {}]   ;;  %s747_s7 = inlined_call_operand.vmem [shape: f32[8,8,256], index: 7, kind: input, shape index: {}]   ;;  %s748_s8 = inlined_call_operand.vmem [shape: f32[8,256], index: 8, kind: output, shape index: {}]  }
   0x1 LB: > { %s621_s28 = sadd.s32 4294967295, %s567_s27   ;;  %p499_p0 = scmp.ge.s32.totalorder %s567_s27, 1  ;;  %s567_s27 = sphi %s615_s27, %s19_s27  }
   0x2   : > { %p228_p1 = scmp.lt.s32.totalorder %s567_s27, 9  ;;  %s241_s9 = sshll.u32 %s740_s0, 4  ;;  %s242_s9 = int_to_ptr.vmem [resolvable:$true] %s241_s9 }
   0x3   : > { %p527_p4 = scmp.eq.s32.totalorder %s621_s28, 0  ;;  %s542_s11 = scalar_lea.vmem %s242_s9, 128 }
   0x4   : > { %p629_p3 = pnand %p499_p0, %p228_p1  ;;  %p543_p7 = scmp.ne.s32.totalorder %s242_s9, %s542_s11 }
   0x5   : > { %p550_p11 = scmp.lt.s32.totalorder %s242_s9, %s242_s9  ;;  %p551_p12 = scmp.lt.s32.totalorder %s542_s11, %s542_s11 }
   0x6   : > { %p523_p5 = pneg %p629_p3 }
   0x7   : > { %p552_p13 = por %p551_p12, %p550_p11 }
   0x8   : > { %p524_p6 = pnand %p527_p4, %p523_p5 }
   0xa   : > { %p544_p8 = pneg %p524_p6 }
   0xc   : > { %p545_p9 = pnand %p544_p8, %p543_p7 }
   0xe   : > { %p546_p10 = pneg %p545_p9 }
  0x10   : > { %p553_p2 = pnand %p552_p13, %p546_p10 }
  0x12   : > { %556 = shalt.err (!%p553_p2)
}
  0x13   : > { %s569_s12 = smov [#allocation2]   ;;  %290 = sbr.rel (%p629_p3) target bundleno = 82 (0x52), region = 52 }
  0x14   : > { %526 = dma.vmem_to_smem (!%p524_p6), %s242_s9, 128, %s569_s12, [#allocation3]  }
  0x18   : > { %562 = dma.done.wait (%p527_p4), [#allocation3], 128  }
  0x19   : > { %564 = vsyncadd (%p527_p4), [#allocation3], 4294967168 }
  0x1a   : > { %296 = sfence }
  0x1b   : > { %p330_p0 = scmp.lt.s32.totalorder %s621_s28, 7  ;;  %p750_p1 = scmp.ne.s32.totalorder %s621_s28, 0 }
  0x1d   : > { %s331_s13 = scalar_select %p330_p0, %s621_s28, 7 }
  0x1e   : > { %348 = sbr.rel (%p750_p1) target bundleno = 37 (0x25), region = 60 }
  0x1f   : > { %s516_s14 = sshll.u32 %s331_s13, 4 }
  0x20   : > { %s649_s17 = scalar_lea.vmem %s745_s5, %s516_s14  ;;  %s654_s20 = scalar_lea.vmem %s746_s6, %s516_s14 }
  0x21   : > { %s659_s23 = scalar_lea.vmem %s747_s7, %s516_s14 }
  0x23   : > { %v349_v0 = vld [vmem:[%s741_s1] sm:$0xff]  ;;  %v350_v1 = vld [vmem:[%s741_s1 + $0x8] sm:$0xff] }
  0x24   : > { %351 = vst [vmem:[%s748_s8] sm:$0xff] %v349_v0  ;;  %352 = vst [vmem:[%s748_s8 + $0x8] sm:$0xff] %v350_v1 }
  0x25 PF: > { %s676_s12 = sshll.u32 %s621_s28, 7  ;;  %v373_v3 = vld [vmem:[%s744_s4] sm:$0xff]  ;;  %v374_v5 = vld [vmem:[%s744_s4 + $0x8] sm:$0xff]  ;;  %v512_v6 = vld [vmem:[%s744_s4 + $0x10] sm:$0xff] }
  0x26   : > { %s367_s13 = sadd.s32 7, %s676_s12  ;;  %v513_v7 = vld [vmem:[%s744_s4 + $0x18] sm:$0xff]  ;;  %s355_s9 = sadd.s32 1, %s676_s12  ;;  %v387_v15 = vld [vmem:[%s742_s2] sm:$0xff]  ;;  %v388_v19 = vld [vmem:[%s742_s2 + $0x8] sm:$0xff] }
  0x27   : > { %s368_s14 = sld [smem:[#allocation2 + %s367_s13]]  ;;  %s359_s11 = sadd.s32 3, %s676_s12  ;;  %v392_v17 = vld [vmem:[%s649_s17] sm:$0xff]  ;;  %v393_v20 = vld [vmem:[%s649_s17 + $0x8] sm:$0xff] }
  0x28   : > { %s354_s10 = sld [smem:[#allocation2 + %s676_s12]]  ;;  %s361_s15 = sadd.s32 4, %s676_s12  ;;  %v407_v25 = vld [vmem:[%s654_s20] sm:$0xff]  ;;  %v408_v31 = vld [vmem:[%s654_s20 + $0x8] sm:$0xff] }
  0x29   : > { %s356_s13 = sld [smem:[#allocation2 + %s355_s9]]  ;;  %s357_s18 = sadd.s32 2, %s676_s12  ;;  %v371_v32 = vld [vmem:[%s743_s3] sm:$0xff]  ;;  %v372_v38 = vld [vmem:[%s743_s3 + $0x8] sm:$0xff] }
  0x2a   : > { %s360_s16 = sld [smem:[#allocation2 + %s359_s11]]  ;;  %s365_s28 = sadd.s32 6, %s676_s12  ;;  %v416_v43 = vsub.f32 1.0, %v371_v32  ;;  %v417_v45 = vsub.f32 1.0, %v372_v38  ;;  %v425_v48 = vld [vmem:[%s659_s23] sm:$0xff]  ;;  %v426_v53 = vld [vmem:[%s659_s23 + $0x8] sm:$0xff] }
  0x2b   : > { %v369_v2 = vld [vmem:[%s748_s8] sm:$0xff]  ;;  %v370_v4 = vld [vmem:[%s748_s8 + $0x8] sm:$0xff]  ;;  %s702_s19 = sld [smem:[#allocation2 + %s361_s15]]  ;;  %s363_s26 = sadd.s32 5, %s676_s12 }
  0x2c   : > { %v375_v8 = vmul.f32 %v373_v3, %v369_v2  ;;  %v376_v9 = vmul.f32 %v374_v5, %v370_v4  ;;  %s716_s29 = sld [smem:[#allocation2 + %s365_s28]] }
  0x2d   : > { %v380_v10 = vstv %s368_s14  ;;  %s704_s14 = sld [smem:[#allocation2 + %s357_s18]] }
  0x2e   : > { %v381_v11 = vmul.f32 %v512_v6, %v380_v10  ;;  %v382_v12 = vmul.f32 %v513_v7, %v380_v10  ;;  %v389_v16 = vstv %s354_s10  ;;  %s364_s30 = sld [smem:[#allocation2 + %s363_s26]] }
  0x2f   : > { %v394_v18 = vstv %s356_s13  ;;  %v390_v22 = vmul.f32 %v389_v16, %v387_v15  ;;  %v391_v27 = vmul.f32 %v389_v16, %v388_v19 }
  0x30   : > { %v383_v13 = vadd.f32 %v381_v11, %v375_v8  ;;  %v384_v14 = vadd.f32 %v382_v12, %v376_v9  ;;  %v399_v21 = vstv %s360_s16  ;;  %v395_v23 = vmul.f32 %v394_v18, %v392_v17 }
  0x31   : > { %v409_v26 = vstv %s702_s19  ;;  %v396_v28 = vmul.f32 %v394_v18, %v393_v20 }
  0x32   : > { %538 = vtanh.f32 %v383_v13  ;;  %v397_v35 = vadd.f32 %v395_v23, %v390_v22  ;;  %v410_v37 = vmul.f32 %v409_v26, %v407_v25  ;;  %v411_v41 = vmul.f32 %v409_v26, %v408_v31 }
  0x33   : > { %540 = vtanh.f32 %v384_v14  ;;  %v404_v33 = vstv %s704_s14  ;;  %v398_v39 = vadd.f32 %v396_v28, %v391_v27  ;;  %v427_v49 = vstv %s716_s29 }
  0x34   : > { %v414_v47 = vmul.f32 %v397_v35, %v371_v32  ;;  %v422_v54 = vstv %s364_s30  ;;  %v428_v57 = vmul.f32 %v427_v49, %v425_v48  ;;  %v429_v59 = vmul.f32 %v427_v49, %v426_v53 }
  0x35   : > { %v415_v51 = vmul.f32 %v398_v39, %v372_v38 }
  0x3f   : > { %v539_v24 = vpop.eup %538 }
  0x40   : > { %v541_v29 = vpop.eup %540  ;;  %v400_v30 = vmul.f32 %v539_v24, %v399_v21 }
  0x41   : > { %v401_v34 = vmul.f32 %v541_v29, %v399_v21 }
  0x42   : > { %v402_v36 = vsub.f32 %v369_v2, %v400_v30 }
  0x43   : > { %v403_v40 = vsub.f32 %v370_v4, %v401_v34 }
  0x44   : > { %v405_v42 = vmul.f32 %v404_v33, %v402_v36 }
  0x45   : > { %v406_v44 = vmul.f32 %v404_v33, %v403_v40 }
  0x46   : > { %v412_v46 = vadd.f32 %v410_v37, %v405_v42 }
  0x47   : > { %v413_v50 = vadd.f32 %v411_v41, %v406_v44 }
  0x48   : > { %v418_v52 = vmul.f32 %v416_v43, %v412_v46 }
  0x49   : > { %v419_v55 = vmul.f32 %v417_v45, %v413_v50 }
  0x4a   : > { %v420_v56 = vadd.f32 %v418_v52, %v414_v47 }
  0x4b   : > { %v421_v58 = vadd.f32 %v419_v55, %v415_v51 }
  0x4c   : > { %v423_v60 = vmul.f32 %v422_v54, %v420_v56 }
  0x4d   : > { %v424_v61 = vmul.f32 %v422_v54, %v421_v58 }
  0x4e   : > { %v430_v62 = vadd.f32 %v428_v57, %v423_v60 }
  0x4f   : > { %v431_v63 = vadd.f32 %v429_v59, %v424_v61 }
  0x50   : > { %432 = vst [vmem:[%s748_s8] sm:$0xff] %v430_v62 }
  0x51   : > { %433 = vst [vmem:[%s748_s8 + $0x8] sm:$0xff] %v431_v63 }
  0x52 PF: > { %s19_s27 = sadd.s32 1, %s567_s27  }
  0x53   : > { %p16_p2 = scmp.ge.s32.totalorder %s19_s27, 10  }
  0x55   :  { %18 = sbr.rel (!%p16_p2) target bundleno = 1 (0x1), region = 94 }
  0x5a   :  { %445 = vsyncpa [#allocation3], 1 }
  0x5b   :  { %447 = vsyncpa [#allocation3 + $0x1], 1 }

</bundles_post_ra>
